<compile_context>
chip_gen: v7x
topology: tpu7x:2x2x1
jax: 0.10.0
libtpu: 0.0.40
codegen_flags: <defaults>
</compile_context>

<pallas_src>
import jax
import jax.numpy as jnp
from jax.experimental import pallas as pl
from jax.experimental.pallas import tpu as pltpu


def mil2_kernel(x_ref, w1bd_ref, w2bd_ref, e_ref, o_ref):
    # x_ref   : (TB, N*C)  lane-dense input block (kept in its own dtype)
    # w1bd_ref: (N*C, N*H) block-diagonal first Linear (x.dtype), resident
    # w2bd_ref: (N*H, N)   block-diagonal second Linear (f32), resident
    # e_ref   : (N, N*C)   0/1 expansion matrix (f32), resident
    # o_ref   : (TB, N*C)  lane-dense output block
    x_blk = x_ref[...]                                            # loaded once

    # Attention MLP on the idle MXU (per-instance via block-diagonal weights).
    hidden = jnp.tanh(
        jnp.dot(x_blk, w1bd_ref[...], preferred_element_type=jnp.float32)
    )                                                             # (TB, N*H) f32
    logits = jnp.dot(hidden, w2bd_ref[...],
                     preferred_element_type=jnp.float32)          # (TB, N) f32

    # Softmax over the instance axis (last dim of logits), in f32.
    m = jnp.max(logits, axis=-1, keepdims=True)
    e = jnp.exp(logits - m)
    denom = jnp.sum(e, axis=-1, keepdims=True)
    att = e * pl.reciprocal(denom, approx=True)                   # EUP slot

    # Expand att back to the lane-dense layout via the MXU, then weight x.
    att_flat = jnp.dot(att, e_ref[...],
                       preferred_element_type=jnp.float32)        # (TB, N*C) f32
    o_ref[...] = (x_blk * att_flat.astype(x_blk.dtype)).astype(o_ref.dtype)


def mil2_forward(x, w1, w2):
    """x: (B, N, C).  w1: (H, C) torch (out,in) layout.  w2: (1, H) torch layout."""
    B, N, C = x.shape
    H = w1.shape[0]
    NC, NH = N * C, N * H
    dsize = jnp.dtype(x.dtype).itemsize

    # Lane-dense flat view of x (contiguous reshape, no data movement).
    x_flat = x.reshape(B, NC)

    # Block-diagonal weights / expansion so the per-instance MLP becomes plain
    # matmuls on the flat layout (computed once in the wrapper, tiny).
    eye_n = jnp.eye(N, dtype=jnp.float32)
    w1_bd = jnp.kron(eye_n, w1.astype(jnp.float32).T).astype(x.dtype)   # (NC, NH)
    w2_bd = jnp.kron(eye_n, w2.astype(jnp.float32).T)                   # (NH, N)
    e_mat = jnp.kron(eye_n, jnp.ones((1, C), dtype=jnp.float32))        # (N, NC)

    # ---- Per-generation VMEM sizing ----------------------------------------
    try:
        vmem_cap = int(pltpu.get_tpu_info().vmem_capacity_bytes)
    except Exception:
        vmem_cap = 64 * 1024 * 1024  # conservative fallback (v7x-sized)
    # ~96 MiB on v5e/v6e (128 MiB physical), ~48 MiB on v7x (64 MiB physical).
    vmem_limit = min(vmem_cap * 3 // 4, 96 * 1024 * 1024)

    def _padded_bytes(r, c, size):
        return ((r + 7) // 8 * 8) * ((c + 127) // 128 * 128) * size

    nc_pad = (NC + 127) // 128 * 128
    weight_bytes = (_padded_bytes(NC, NH, dsize)
                    + _padded_bytes(NH, N, 4)
                    + _padded_bytes(N, NC, 4))
    # Double-buffered in + out tiles (x.dtype) plus ~4 f32-tile-equivalents of
    # in-kernel intermediates, plus resident weights and fixed headroom.
    budget = vmem_limit - 2 * weight_bytes - (4 << 20)
    per_b = nc_pad * (4 * dsize + 16)
    if budget < per_b:
        # TODO(synk): add an N-tiled (online-softmax) second grid level for very
        # large N where a single (N, C) slab exceeds the VMEM budget.
        raise ValueError("MIL2 Pallas kernel: one (N, C) slab does not fit VMEM")
    tb = min(B, max(1, budget // per_b))

    # Keep >= 2 grid steps when cheap, so v7x's two TensorCores both get work;
    # the tile's second-minor dim must be a multiple of 8 or the full batch.
    half = -(-B // 2)
    if half >= 8:
        tb = min(tb, half)
    if tb < B:
        tb = max(8, tb // 8 * 8)
        if tb >= B:
            tb = B

    # No jnp.pad: Pallas clips the tail block; garbage in OOB rows only feeds
    # discarded writes (rows are fully independent).
    grid = (pl.cdiv(B, tb),)

    out_flat = pl.pallas_call(
        mil2_kernel,
        out_shape=jax.ShapeDtypeStruct((B, NC), x.dtype),
        grid=grid,
        in_specs=[
            pl.BlockSpec((tb, NC), lambda i: (i, 0)),    # x tile (lane-dense)
            pl.BlockSpec((NC, NH), lambda i: (0, 0)),    # resident weights
            pl.BlockSpec((NH, N), lambda i: (0, 0)),
            pl.BlockSpec((N, NC), lambda i: (0, 0)),
        ],
        out_specs=pl.BlockSpec((tb, NC), lambda i: (i, 0)),
        compiler_params=pltpu.CompilerParams(
            dimension_semantics=("parallel",),           # megacore split on v7x
            vmem_limit_bytes=vmem_limit,
        ),
    )(x_flat, w1_bd, w2_bd, e_mat)

    return out_flat.reshape(B, N, C)


def mil2_reference(x, w1, w2):
    B, N, C = x.shape
    h = jnp.tanh(x.reshape(B * N, C) @ w1.T)
    logits = (h @ w2.T).reshape(B, N, 1)
    att = jax.nn.softmax(logits, axis=1)
    return x * att


if __name__ == "__main__":
    # MIL2(channel=32, att_type='normal'); reduction=16 -> hidden width H = 2.
    B, N, C = 2, 8, 32
    H = C // 16

    key = jax.random.PRNGKey(0)
    kx, kw1, kw2 = jax.random.split(key, 3)
    x = jax.random.normal(kx, (B, N, C), dtype=jnp.float32)
    # "Linear" weights in PyTorch (out, in) layout, no bias.
    w1 = jax.random.normal(kw1, (H, C), dtype=jnp.float32) * 0.1
    w2 = jax.random.normal(kw2, (1, H), dtype=jnp.float32) * 0.1

    out = mil2_forward(x, w1, w2)
    jax.block_until_ready(out)

    ref = mil2_reference(x, w1, w2)
    assert out.shape == (B, N, C)
    # Tolerance loosened slightly for the EUP approximate reciprocal in softmax.
    assert jnp.allclose(out, ref, atol=2e-3, rtol=2e-3), float(
        jnp.max(jnp.abs(out - ref))
    )

    print("KERNEL_OK")
</pallas_src>

<mosaic_0001>
module attributes {stable_mosaic.version = 11 : i64} {
  func.func @mil2_kernel(%arg0: i32, %arg1: memref<2x256xf32, #tpu.memory_space<vmem>>, %arg2: memref<256x16xf32, #tpu.memory_space<vmem>>, %arg3: memref<16x8xf32, #tpu.memory_space<vmem>>, %arg4: memref<8x256xf32, #tpu.memory_space<vmem>>, %arg5: memref<2x256xf32, #tpu.memory_space<vmem>>) attributes {dimension_semantics = [#tpu.dimension_semantics<parallel>], iteration_bounds = array<i64: 1>, scalar_prefetch = 0 : i64, scratch_operands = 0 : i64, tpu.core_type = #tpu.core_type<tc>, window_params = [{transform_indices = @transform_0, window_bounds = array<i64: 2, 256>}, {pipeline_mode = #tpu.pipeline_mode<synchronous>, transform_indices = @transform_1, window_bounds = array<i64: 256, 16>}, {pipeline_mode = #tpu.pipeline_mode<synchronous>, transform_indices = @transform_2, window_bounds = array<i64: 16, 8>}, {pipeline_mode = #tpu.pipeline_mode<synchronous>, transform_indices = @transform_3, window_bounds = array<i64: 8, 256>}, {transform_indices = @transform_4, window_bounds = array<i64: 2, 256>}]} {
    %c0 = arith.constant 0 : index
    %c0_0 = arith.constant 0 : index
    %0 = vector.load %arg1[%c0, %c0_0] : memref<2x256xf32, #tpu.memory_space<vmem>>, vector<2x256xf32>
    %c0_1 = arith.constant 0 : index
    %c0_2 = arith.constant 0 : index
    %1 = vector.load %arg2[%c0_1, %c0_2] : memref<256x16xf32, #tpu.memory_space<vmem>>, vector<256x16xf32>
    %cst = arith.constant dense<0.000000e+00> : vector<2x16xf32>
    %2 = tpu.matmul %0, %1, %cst {dimension_numbers = #tpu.dot_dimension_numbers<[1], [0], [0], [1], [0, 0, 1, 1], [], []>} : vector<2x256xf32>, vector<256x16xf32>, vector<2x16xf32> -> vector<2x16xf32>
    %3 = math.tanh %2 : vector<2x16xf32>
    %c0_3 = arith.constant 0 : index
    %c0_4 = arith.constant 0 : index
    %4 = vector.load %arg3[%c0_3, %c0_4] : memref<16x8xf32, #tpu.memory_space<vmem>>, vector<16x8xf32>
    %cst_5 = arith.constant dense<0.000000e+00> : vector<2x8xf32>
    %5 = tpu.matmul %3, %4, %cst_5 {dimension_numbers = #tpu.dot_dimension_numbers<[1], [0], [0], [1], [0, 0, 1, 1], [], []>} : vector<2x16xf32>, vector<16x8xf32>, vector<2x8xf32> -> vector<2x8xf32>
    %cst_6 = arith.constant dense<0xFF800000> : vector<2xf32>
    %6 = vector.multi_reduction <maximumf>, %5, %cst_6 [1] : vector<2x8xf32> to vector<2xf32>
    %7 = vector.shape_cast %6 : vector<2xf32> to vector<2x1xf32>
    %8 = vector.broadcast %7 : vector<2x1xf32> to vector<2x8xf32>
    %9 = arith.subf %5, %8 : vector<2x8xf32>
    %10 = math.exp %9 : vector<2x8xf32>
    %cst_7 = arith.constant dense<0.000000e+00> : vector<2xf32>
    %11 = vector.multi_reduction <add>, %10, %cst_7 [1] : vector<2x8xf32> to vector<2xf32>
    %12 = vector.shape_cast %11 : vector<2xf32> to vector<2x1xf32>
    %13 = tpu.reciprocal %12 {approx = true} : vector<2x1xf32> -> vector<2x1xf32>
    %14 = vector.broadcast %13 : vector<2x1xf32> to vector<2x8xf32>
    %15 = arith.mulf %10, %14 : vector<2x8xf32>
    %c0_8 = arith.constant 0 : index
    %c0_9 = arith.constant 0 : index
    %16 = vector.load %arg4[%c0_8, %c0_9] : memref<8x256xf32, #tpu.memory_space<vmem>>, vector<8x256xf32>
    %cst_10 = arith.constant dense<0.000000e+00> : vector<2x256xf32>
    %17 = tpu.matmul %15, %16, %cst_10 {dimension_numbers = #tpu.dot_dimension_numbers<[1], [0], [0], [1], [0, 0, 1, 1], [], []>} : vector<2x8xf32>, vector<8x256xf32>, vector<2x256xf32> -> vector<2x256xf32>
    %18 = arith.mulf %0, %17 : vector<2x256xf32>
    %c0_11 = arith.constant 0 : index
    %c0_12 = arith.constant 0 : index
    %19 = vector.load %arg5[%c0_11, %c0_12] : memref<2x256xf32, #tpu.memory_space<vmem>>, vector<2x256xf32>
    tpu.vector_store %arg5[%c0_11, %c0_12], %18 {strides = array<i32>} : memref<2x256xf32, #tpu.memory_space<vmem>>, vector<2x256xf32>,
    return
  }
  func.func @transform_0(%arg0: i32) -> (i32, i32) {
    %c0_i32 = arith.constant 0 : i32
    %c0_i32_0 = arith.constant 0 : i32
    return %arg0, %c0_i32 : i32, i32
  }
  func.func @transform_1(%arg0: i32) -> (i32, i32) {
    %c0_i32 = arith.constant 0 : i32
    %c0_i32_0 = arith.constant 0 : i32
    %c0_i32_1 = arith.constant 0 : i32
    return %c0_i32, %c0_i32_0 : i32, i32
  }
  func.func @transform_2(%arg0: i32) -> (i32, i32) {
    %c0_i32 = arith.constant 0 : i32
    %c0_i32_0 = arith.constant 0 : i32
    %c0_i32_1 = arith.constant 0 : i32
    return %c0_i32, %c0_i32_0 : i32, i32
  }
  func.func @transform_3(%arg0: i32) -> (i32, i32) {
    %c0_i32 = arith.constant 0 : i32
    %c0_i32_0 = arith.constant 0 : i32
    %c0_i32_1 = arith.constant 0 : i32
    return %c0_i32, %c0_i32_0 : i32, i32
  }
  func.func @transform_4(%arg0: i32) -> (i32, i32) {
    %c0_i32 = arith.constant 0 : i32
    %c0_i32_0 = arith.constant 0 : i32
    return %arg0, %c0_i32 : i32, i32
  }
}

</mosaic_0001>

<bundles_post_ra>
// kernel: tpu_custom_call.1
= control target key start
LH: loop header
LB: loop body
LE: loop exit
PB: predicated region body
PF: predicated region fallthrough
CT: control target
= control target key end

     0   :  { %v55_v3 = vlaneseq  ;;  %v442_v8 = vmov 1983009808   ;;  %s603_s0 = inlined_call_operand.vmem [shape: f32[2,256], index: 0, kind: input, shape index: {}]   ;;  %s604_s1 = inlined_call_operand.vmem [shape: f32[256,16], index: 1, kind: input, shape index: {}]   ;;  %s605_s2 = inlined_call_operand.vmem [shape: f32[16,8], index: 2, kind: input, shape index: {}]   ;;  %s606_s3 = inlined_call_operand.vmem [shape: f32[8,256], index: 3, kind: input, shape index: {}]   ;;  %s607_s4 = inlined_call_operand.hbm [shape: f32[2,256], index: 4, kind: output, shape index: {}]  }
   0x1   :  { %v35_v0 = vld [vmem:[%s604_s1 + $0x80] sm:$0xff]  ;;  %v36_v1 = vld [vmem:[%s604_s1 + $0x88] sm:$0xff]  ;;  %v37_v6 = vld [vmem:[%s604_s1 + $0x90] sm:$0xff]  ;;  %v53_v9 = vunpack.c.l.s4 %v442_v8 }
   0x2   :  { %v19_v2 = vld [vmem:[%s604_s1] sm:$0xff]  ;;  %v372_v4 = vpack.c.bf16 %v36_v1, %v35_v0  ;;  %v20_v5 = vld [vmem:[%s604_s1 + $0x8] sm:$0xff]  ;;  %v38_v7 = vld [vmem:[%s604_s1 + $0x98] sm:$0xff]  ;;  %v56_v17 = vshrl.u32 %v55_v3, 7 }
   0x3   :  { %v374_v10 = vpack.c.bf16 %v20_v5, %v19_v2  ;;  %v376_v11 = vpack.c.bf16 %v38_v7, %v37_v6  ;;  %v21_v12 = vld [vmem:[%s604_s1 + $0x10] sm:$0xff]  ;;  %v22_v13 = vld [vmem:[%s604_s1 + $0x18] sm:$0xff]  ;;  %v39_v14 = vld [vmem:[%s604_s1 + $0xa0] sm:$0xff]  ;;  %v54_v16 = vunpack.c.0.s8 %v53_v9 }
   0x4   :  { %373 = vmatprep.subr.bf16.mxu0 %v372_v4  ;;  %v40_v15 = vld [vmem:[%s604_s1 + $0xa8] sm:$0xff]  ;;  %v378_v18 = vpack.c.bf16 %v22_v13, %v21_v12  ;;  %v23_v20 = vld [vmem:[%s604_s1 + $0x20] sm:$0xff]  ;;  %v41_v22 = vld [vmem:[%s604_s1 + $0xb0] sm:$0xff] }
   0x5   :  { %375 = vmatpush3.bf16.msra.mxu0 %v374_v10  ;;  %v380_v19 = vpack.c.bf16 %v40_v15, %v39_v14  ;;  %v24_v21 = vld [vmem:[%s604_s1 + $0x28] sm:$0xff]  ;;  %v42_v23 = vld [vmem:[%s604_s1 + $0xb8] sm:$0xff]  ;;  %v514_v24 = vsub.s32 %v54_v16, %v56_v17  ;;  %v25_v27 = vld [vmem:[%s604_s1 + $0x30] sm:$0xff] }
   0x6   :  { %377 = vmatprep.subr.bf16.mxu0 %v376_v11  ;;  %v382_v25 = vpack.c.bf16 %v24_v21, %v23_v20  ;;  %v384_v26 = vpack.c.bf16 %v42_v23, %v41_v22  ;;  %v26_v28 = vld [vmem:[%s604_s1 + $0x38] sm:$0xff]  ;;  %v43_v29 = vld [vmem:[%s604_s1 + $0xc0] sm:$0xff]  ;;  %v44_v30 = vld [vmem:[%s604_s1 + $0xc8] sm:$0xff] }
   0x7   :  { %v531_v31 = vld [vmem:[%s603_s0] sm:$0xf] }
   0x8   :  { %v58_v32 = vrot.slane %v531_v31, %v514_v24 }
   0x9   :  { %379 = vmatpush3.bf16.msra.mxu0 %v378_v18 }
   0xa   :  { %381 = vmatprep.subr.bf16.mxu0 %v380_v19 }
   0xb   :  { %9 = vsyncpa [#allocation3], 0  ;;  %v386_v33 = vpack.c.bf16 %v26_v28, %v25_v27  ;;  %v388_v34 = vpack.c.bf16 %v44_v30, %v43_v29  ;;  %v27_v35 = vld [vmem:[%s604_s1 + $0x40] sm:$0xff]  ;;  %v28_v36 = vld [vmem:[%s604_s1 + $0x48] sm:$0xff]  ;;  %v59_v37 = vcombine.high %v58_v32, %v58_v32  ;;  %v443_v59 = vmov 0.0|0.0   ;;  %s446_s7 = smov [#allocation2]  }
   0xc   :  { %v45_v38 = vld [vmem:[%s604_s1 + $0xd0] sm:$0xff]  ;;  %v46_v39 = vld [vmem:[%s604_s1 + $0xd8] sm:$0xff]  ;;  %v390_v40 = vpack.c.bf16 %v28_v36, %v27_v35  ;;  %v47_v44 = vld [vmem:[%s604_s1 + $0xe0] sm:$0xff]  ;;  %404 = vmatprep.subr.bf16.mxu1 %v443_v59  ;;  %vm444_vm0 = vmmov 0   ;;  %v445_v61 = vmov 0.0   ;;  %vm135_vm1 = vcmask 130048  }
   0xd   :  { %383 = vmatpush3.bf16.msra.mxu0 %v382_v25  ;;  %126 = vmatprep.mubr.f32.mxu0 %v59_v37  ;;  %v392_v41 = vpack.c.bf16 %v46_v39, %v45_v38  ;;  %v29_v42 = vld [vmem:[%s604_s1 + $0x50] sm:$0xff]  ;;  %v30_v43 = vld [vmem:[%s604_s1 + $0x58] sm:$0xff]  ;;  %v48_v45 = vld [vmem:[%s604_s1 + $0xe8] sm:$0xff]  ;;  %vm209_vm2 = vcmask 58368   ;;  %vm223_vm3 = vcmask 64512   ;;  %s317_s8 = sshll.u32 %s446_s7, 4  ;;  %s318_s8 = int_to_ptr.vmem [resolvable:$true] %s317_s8 }
   0xe   :  { %385 = vmatprep.subr.bf16.mxu0 %v384_v26  ;;  %v394_v46 = vpack.c.bf16 %v30_v43, %v29_v42  ;;  %v396_v47 = vpack.c.bf16 %v48_v45, %v47_v44  ;;  %v31_v48 = vld [vmem:[%s604_s1 + $0x60] sm:$0xff]  ;;  %v32_v49 = vld [vmem:[%s604_s1 + $0x68] sm:$0xff]  ;;  %v49_v50 = vld [vmem:[%s604_s1 + $0xf0] sm:$0xff]  ;;  %369 = vmatprep.mubr.msk.f32.mxu1 %vm444_vm0, %v445_v61  ;;  %s418_s9 = scalar_lea.vmem %s318_s8, 64  ;;  %p423_p1 = scmp.lt.s32.totalorder %s318_s8, %s318_s8 }
   0xf   :  { %v50_v51 = vld [vmem:[%s604_s1 + $0xf8] sm:$0xff]  ;;  %v398_v52 = vpack.c.bf16 %v32_v49, %v31_v48  ;;  %v33_v54 = vld [vmem:[%s604_s1 + $0x70] sm:$0xff]  ;;  %v133_v57 = vld [vmem:[%s605_s2] sm:$0xff]  ;;  %p419_p0 = scmp.ne.s32.totalorder %s318_s8, %s418_s9  ;;  %p424_p2 = scmp.lt.s32.totalorder %s418_s9, %s418_s9 }
  0x10   :  { %v400_v53 = vpack.c.bf16 %v50_v51, %v49_v50  ;;  %v34_v55 = vld [vmem:[%s604_s1 + $0x78] sm:$0xff]  ;;  %v134_v58 = vld [vmem:[%s605_s2 + $0x8] sm:$0xff]  ;;  %v221_v11 = vld [vmem:[%s606_s3] sm:$0xff] }
  0x11   :  { %387 = vmatpush3.bf16.msra.mxu0 %v386_v33  ;;  %v402_v56 = vpack.c.bf16 %v34_v55, %v33_v54  ;;  %v405_v60 = vpack.c.bf16 %v134_v58, %v133_v57  ;;  %v222_v10 = vld [vmem:[%s606_s3 + $0x8] sm:$0xff]  ;;  %p425_p3 = por %p424_p2, %p423_p1 }
  0x12   :  { %389 = vmatprep.subr.bf16.mxu0 %v388_v34 }
  0x13   :  { %406 = vmatpush3.bf16.msra.mxu1 %v405_v60  ;;  %p426_p4 = pnand %p425_p3, %p419_p0 }
  0x14   :  { %227 = vmatprep.subr.mxu1 %v222_v10 }
  0x15   :  { %391 = vmatpush3.bf16.msra.mxu0 %v390_v40 }
  0x16   :  { %393 = vmatprep.subr.bf16.mxu0 %v392_v41 }
  0x19   :  { %395 = vmatpush3.bf16.msra.mxu0 %v394_v46 }
  0x1a   :  { %397 = vmatprep.subr.bf16.mxu0 %v396_v47 }
  0x1d   :  { %399 = vmatpush3.bf16.msra.mxu0 %v398_v52 }
  0x1e   :  { %401 = vmatprep.subr.bf16.mxu0 %v400_v53 }
  0x21   :  { %403 = vmatpush3.bf16.msra.mxu0 %v402_v56 }
  0x24   :  { %127 = vmatmul.mubr.f32.vlgmr.msra.gmra.mrb[0].mxu0 %v58_v32 }
  0xf7   :  { %v359_v62 = vpop.f32.mrb[0].mxu0 }
  0xf8   :  { %v360_v63 = vpop.f32.mrb[1].mxu0 }
  0xf9   :  { %v361_v0 = vadd.f32 %v360_v63, %v359_v62 }
  0xfb   :  { %412 = vtanh.f32 %v361_v0 }
 0x105   :  { %v413_v1 = vpop.eup %412 }
 0x106   :  { %370 = vmatmul.mubr.msk.f32.vlgmr.msra.gmra.mrb[0].mxu1 %vm135_vm1, %v413_v1 }
 0x107   :  { %291 = vmatprep.mubr.f32.mxu1 %v445_v61  ;;  %228 = vmatpush1.msra.mxu1 %v221_v11 }
 0x1d9   :  { %v205_v2 = vpop.f32.mrb[0].mxu1 }
 0x1da   :  { %v371_v3 = vpop.f32.mrb[1].mxu1  ;;  %v210_v4 = vsel %vm209_vm2, %v205_v2, -inf }
 0x1db   :  { %211 = vmax.xlane.f32.xlu0 %v210_v4 }
 0x268   :  { %v212_v5 = vpop.xlane.xlu0 %211 }
 0x269   :  { %v213_v6 = vsub.f32 %v205_v2, %v212_v5 }
 0x26b   :  { %v214_v7 = vmul.f32 1.442695, %v213_v6 }
 0x26d   :  { %414 = vpow2.f32 %v214_v7 }
 0x277   :  { %v415_v8 = vpop.eup %414 }
 0x278   :  { %v216_v9 = vsel %vm209_vm2, %v415_v8, 0.0 }
 0x279   :  { %217 = vadd.xlane.f32.xlu0 %v216_v9 }
 0x306   :  { %v218_v12 = vpop.xlane.xlu0 %217 }
 0x307   :  { %416 = vrcp.f32 %v218_v12 }
 0x311   :  { %v417_v13 = vpop.eup %416 }
 0x312   :  { %v220_v14 = vmul.f32 %v417_v13, %v415_v8 }
 0x314   :  { %326 = vmatmul.mubr.msk.f32.vlgmr.msra.gmra.mrb[2].mxu1 %vm223_vm3, %v220_v14 }
 0x3e7   :  { %v293_v15 = vpop.f32.mrb[2].mxu1 }
 0x3e8   :  { %v295_v16 = vpop.f32.mrb[3].mxu1 }
 0x3e9   :  { %v300_v17 = vcombine.low %v293_v15, %v295_v16 }
 0x3eb   :  { %v307_v18 = vrot.slane %v300_v17, %v514_v24 }
 0x3ed   :  { %v309_v19 = vmul.f32 %v307_v18, %v531_v31 }
 0x3ef   :  { %310 = vst [vmem:[#allocation2] sm:$0xf] %v309_v19 }
 0x3f0   :  { %429 = shalt.err (!%p426_p4)
}
 0x3f1   :  { %s430_s11 = scalar_lea.hbm %s607_s4, 64 }
 0x3f2   :  { %p431_p5 = scmp.ne.s32.totalorder %s607_s4, %s430_s11  ;;  %p434_p6 = scmp.lt.u32.totalorder %s430_s11, %s607_s4 }
 0x3f4   :  { %p436_p7 = pnand %p434_p6, %p431_p5 }
 0x3f6   :  { %439 = shalt.err (!%p436_p7)
}
 0x3f7   :  { %320 = dma.vmem_to_hbm [thread:$0]  %s318_s8, 64, %s607_s4, [#allocation3]  }
 0x3f8   :  { %440 = dma.done.wait [#allocation3], 64  }
 0x3f9   :  { %441 = vsyncadd [#allocation3], 4294967232 }
 0x3fa   :  { %324 = vsyncpa [#allocation3], 1 }

</bundles_post_ra>
